<compile_context>
chip_gen: v6e
topology: v6e:2x2x1
jax: 0.10.0
libtpu: 0.0.40
codegen_flags: <defaults>
</compile_context>

<pallas_src>
import math

import jax
import jax.numpy as jnp
from jax.experimental import pallas as pl
from jax.experimental.pallas import tpu as pltpu

_MIB = 1024 * 1024


def _round_up(x, m):
    return ((x + m - 1) // m) * m


def _divisor_tile(dim, align, cap):
    """Largest multiple of `align` that divides round_up(dim, align) and is <= cap.

    Divisor tiles mean the padded extent equals round_up(dim, align): no
    tile-induced padding, so no wasted HBM traffic or MXU work.  (If the
    number of align-units is prime and exceeds the cap this degrades to
    `align`; correct, just more grid steps.)
    """
    padded = _round_up(max(int(dim), 1), align)
    units = padded // align
    max_units = max(cap // align, 1)
    best = 1
    for d in range(1, units + 1):
        if units % d == 0 and d <= max_units:
            best = d
    return best * align


def _chip_config():
    """Returns (tile caps (m, k, n), vmem_limit_bytes, tensorcores_per_chip)."""
    vmem_cap = 64 * _MIB                       # conservative default (v7x-sized)
    try:
        vmem_cap = int(pltpu.get_tpu_info().vmem_capacity_bytes)
    except Exception:
        pass
    n_tc = 1
    try:
        kind = jax.devices()[0].device_kind.lower()
        if ("v7" in kind) or ("v4" in kind) or ("v5p" in kind):
            n_tc = 2                           # dual-TensorCore / megacore chips
    except Exception:
        pass
    if vmem_cap >= 96 * _MIB:                  # v5e / v6e: 128 MiB physical VMEM
        caps = (512, 2048, 2048)
        vmem_limit = 100 * _MIB
    else:                                      # v7x: 64 MiB physical VMEM
        caps = (512, 1024, 1024)
        vmem_limit = 48 * _MIB
    return caps, vmem_limit, n_tc


def _working_set_bytes(tm, tk, tn, in_itemsize, out_itemsize, use_scratch):
    ws = 2 * (tm * tk + tk * tn) * in_itemsize      # x + W, double-buffered
    ws += 2 * tm * tn * out_itemsize                # output, double-buffered
    ws += 2 * tn * 4                                # bias row
    if use_scratch:
        ws += tm * tn * 4                           # f32 accumulator scratch
    return ws


def _make_fc_kernel(nl, acc_in_out):
    """Kernel factory; activation and accumulator strategy are trace-time choices."""

    def _finalize(acc, b_ref, alpha_ref):
        y = acc + b_ref[...]                        # (1, tn) broadcasts over rows
        if nl == "relu":
            y = jnp.maximum(y, 0.0)
        elif nl == "prelu":
            y = jnp.where(y > 0.0, y, y * alpha_ref[0, 0])   # SMEM scalar
        return y

    if acc_in_out:
        # f32 output: accumulate directly into the resident output block (its
        # block index is constant across k) — no scratch, no finalize copy.
        def kernel(x_ref, w_ref, b_ref, alpha_ref, o_ref):
            k = pl.program_id(2)

            @pl.when(k == 0)
            def _():
                o_ref[...] = jnp.zeros_like(o_ref)

            o_ref[...] += jnp.dot(x_ref[...], w_ref[...],
                                  preferred_element_type=jnp.float32)

            @pl.when(k == pl.num_programs(2) - 1)
            def _():
                o_ref[...] = _finalize(o_ref[...], b_ref, alpha_ref)
    else:
        def kernel(x_ref, w_ref, b_ref, alpha_ref, o_ref, acc_ref):
            k = pl.program_id(2)

            @pl.when(k == 0)
            def _():
                acc_ref[...] = jnp.zeros_like(acc_ref)

            acc_ref[...] += jnp.dot(x_ref[...], w_ref[...],
                                    preferred_element_type=jnp.float32)

            @pl.when(k == pl.num_programs(2) - 1)
            def _():
                o_ref[...] = _finalize(acc_ref[...], b_ref, alpha_ref).astype(o_ref.dtype)

    return kernel


def prepare_fc_params(weight_t, bias, compute_dtype=None):
    """Pad/cast the static parameters ONCE at init time.

    Returns (weight_padded, bias_row_padded, out_features).  Feeding these to
    fc_forward (with out_features=...) avoids the per-call jnp.pad of the
    weight, which would otherwise be an extra full HBM pass over the weight
    matrix outside the kernel.  Pass compute_dtype=jnp.bfloat16 to store the
    weights in bf16 (halves weight bytes in the weight-bandwidth-bound regime).
    """
    fin, fout = weight_t.shape
    kp, np_ = _round_up(fin, 128), _round_up(fout, 128)
    w = weight_t if compute_dtype is None else weight_t.astype(compute_dtype)
    if (kp, np_) != (fin, fout):
        w = jnp.pad(w, ((0, kp - fin), (0, np_ - fout)))
    b = bias.astype(jnp.float32).reshape(1, fout)
    if np_ != fout:
        b = jnp.pad(b, ((0, 0), (0, np_ - fout)))
    return w, b, fout


def fc_forward(x, weight_t, bias, nl="relu", prelu_alpha=None,
               compute_dtype=None, out_features=None):
    """Fused y = act(x @ W_t + b).

    x: (B, in_features); weight_t: (in_features, out_features) or pre-padded via
    prepare_fc_params (then pass out_features); bias: (out_features,) or the
    pre-padded (1, Np) row.  nl: 'relu' | 'prelu' | None.
    compute_dtype: e.g. jnp.bfloat16 to feed the MXU with bf16 operands
    (accumulation stays f32) — recommended for inference since small-batch FC
    is weight-bandwidth bound on every TPU generation.
    """
    B, Fin = x.shape
    Kw, Nw = weight_t.shape
    Fout = int(out_features) if out_features is not None else Nw
    Kp = _round_up(Fin, 128)
    Np = _round_up(Fout, 128)
    assert Kw in (Fin, Kp) and Nw in (Fout, Np), (
        f"weight_t must be ({Fin},{Fout}) or pre-padded to ({Kp},{Np}); got {weight_t.shape}")

    out_dtype = x.dtype
    if compute_dtype is not None:
        x = x.astype(compute_dtype)
        if weight_t.dtype != compute_dtype:
            weight_t = weight_t.astype(compute_dtype)
    acc_in_out = out_dtype == jnp.float32        # accumulate straight into o_ref

    in_itemsize = x.dtype.itemsize
    out_itemsize = out_dtype.itemsize
    m_align = max(8, 32 // in_itemsize)          # 8 for f32, 16 for bf16, 32 for 8-bit

    (cap_m, cap_k, cap_n), vmem_limit, n_tc = _chip_config()

    tm = _divisor_tile(B, m_align, cap_m)
    tk = _divisor_tile(Fin, 128, cap_k)
    tn = _divisor_tile(Fout, 128, cap_n)

    # Shrink (largest feature tile first) if the double-buffered working set
    # would overflow the scoped-VMEM budget.
    budget = int(vmem_limit * 0.75)
    while _working_set_bytes(tm, tk, tn, in_itemsize, out_itemsize,
                             not acc_in_out) > budget:
        if tk >= tn and tk > 128:
            tk = _divisor_tile(Fin, 128, tk // 2)
        elif tn > 128:
            tn = _divisor_tile(Fout, 128, tn // 2)
        elif tm > m_align:
            tm = _divisor_tile(B, m_align, tm // 2)
        else:
            break

    Bp = _round_up(B, m_align)

    # Dual-TensorCore chips: guarantee >= 2 parallel output tiles so the second
    # core is not idle on small-batch calls (weight traffic is unchanged; only
    # the small activation tile is re-streamed).
    if n_tc >= 2 and Bp // tm == 1 and Np // tn == 1 and Np // 128 >= 2:
        units = Np // 128
        for d in range(units // 2, 0, -1):
            if units % d == 0:
                tn = d * 128
                break

    # Pad activations / not-yet-padded params.  With divisor tiles this only
    # triggers when a logical dim is not a multiple of 128 (or m_align); for
    # static weights prefer prepare_fc_params() so this never runs per call.
    if (Bp, Kp) != (B, Fin):
        x = jnp.pad(x, ((0, Bp - B), (0, Kp - Fin)))
    if weight_t.shape != (Kp, Np):
        weight_t = jnp.pad(weight_t, ((0, Kp - Kw), (0, Np - Nw)))
    bias2d = bias.astype(jnp.float32).reshape(1, -1)
    if bias2d.shape[1] != Np:
        bias2d = jnp.pad(bias2d, ((0, 0), (0, Np - bias2d.shape[1])))

    if nl == "prelu":
        a = 0.25 if prelu_alpha is None else prelu_alpha    # nn.PReLU default init
    else:
        a = 0.0
    alpha = jnp.asarray(a, jnp.float32).reshape(1, 1)       # SMEM scalar

    kernel = _make_fc_kernel(nl, acc_in_out)
    scratch = [] if acc_in_out else [pltpu.VMEM((tm, tn), jnp.float32)]

    # Grid: (out-feature tiles, batch tiles, K tiles); K innermost feeds the
    # resident accumulator.  W blocks are re-streamed once per batch tile
    # (weight HBM bytes ~ (Bp/tm) * Fin * Fout), hence the large tm cap.
    grid = (Np // tn, Bp // tm, Kp // tk)

    out = pl.pallas_call(
        kernel,
        out_shape=jax.ShapeDtypeStruct((Bp, Np), out_dtype),
        grid_spec=pltpu.PrefetchScalarGridSpec(
            num_scalar_prefetch=0,
            grid=grid,
            in_specs=[
                pl.BlockSpec((tm, tk), lambda j, i, k: (i, k)),      # x
                # If profiling shows exposed W DMA at tiny tm, add
                # pipeline_mode=pl.Buffered(3) to this spec.
                pl.BlockSpec((tk, tn), lambda j, i, k: (k, j)),      # W (in, out)
                pl.BlockSpec((1, tn), lambda j, i, k: (0, j)),       # bias row
                pl.BlockSpec(memory_space=pltpu.MemorySpace.SMEM),   # prelu alpha
            ],
            out_specs=pl.BlockSpec((tm, tn), lambda j, i, k: (i, j)),
            scratch_shapes=scratch,
        ),
        compiler_params=pltpu.CompilerParams(
            dimension_semantics=("parallel", "parallel", "arbitrary"),
            vmem_limit_bytes=vmem_limit,
        ),
    )(x, weight_t, bias2d, alpha)

    return out[:B, :Fout]


def init_fc_params(key, in_features, out_features):
    """Deterministic init matching nn.Linear's default (uniform +/- 1/sqrt(in))."""
    kw, kb = jax.random.split(key)
    bound = 1.0 / math.sqrt(in_features)
    # PyTorch stores weight as (out, in); we keep the transposed layout (in, out).
    weight_t = jax.random.uniform(
        kw, (in_features, out_features), jnp.float32, -bound, bound
    )
    bias = jax.random.uniform(kb, (out_features,), jnp.float32, -bound, bound)
    return weight_t, bias


def _ref(x, w_t, b, nl, alpha=0.25):
    y = x.astype(jnp.float32) @ w_t.astype(jnp.float32) + b[None, :]
    if nl == "relu":
        return jnp.maximum(y, 0.0)
    if nl == "prelu":
        return jnp.where(y > 0, y, alpha * y)
    return y


if __name__ == "__main__":
    key = jax.random.PRNGKey(0)
    k_x, k_p, k_x2, k_p2 = jax.random.split(key, 4)

    # --- small toy shape matching the original module usage -----------------
    batch, in_features, out_features = 8, 32, 64
    x = jax.random.normal(k_x, (batch, in_features), jnp.float32)
    weight_t, bias = init_fc_params(k_p, in_features, out_features)

    out = jax.block_until_ready(fc_forward(x, weight_t, bias, nl="relu"))
    assert out.shape == (batch, out_features)
    assert jnp.allclose(out, _ref(x, weight_t, bias, "relu"), atol=1e-5, rtol=1e-5)

    out_pr = jax.block_until_ready(fc_forward(x, weight_t, bias, nl="prelu"))
    assert jnp.allclose(out_pr, _ref(x, weight_t, bias, "prelu"), atol=1e-5, rtol=1e-5)

    out_id = jax.block_until_ready(fc_forward(x, weight_t, bias, nl=None))
    assert jnp.allclose(out_id, _ref(x, weight_t, bias, None), atol=1e-5, rtol=1e-5)

    # Hoisted-padding path: static params padded once at init, no per-call pad.
    w_pad, b_pad, fout = prepare_fc_params(weight_t, bias)
    out_pp = jax.block_until_ready(
        fc_forward(x, w_pad, b_pad, nl="relu", out_features=fout))
    assert jnp.allclose(out_pp, _ref(x, weight_t, bias, "relu"), atol=1e-5, rtol=1e-5)

    # --- misaligned batch + multi-tile, 128-aligned features (zero padding):
    #     exercises divisor tiles, the K reduction axis, acc-in-output, and
    #     (on dual-core chips) the out-feature split for the megacore ---------
    B2, Fin2, Fout2 = 70, 1152, 640
    x2 = jax.random.normal(k_x2, (B2, Fin2), jnp.float32)
    w2, b2 = init_fc_params(k_p2, Fin2, Fout2)

    out2 = jax.block_until_ready(fc_forward(x2, w2, b2, nl="relu"))
    assert out2.shape == (B2, Fout2)
    assert jnp.allclose(out2, _ref(x2, w2, b2, "relu"), atol=1e-4, rtol=1e-4)

    # bf16 MXU path (f32 accumulation, f32 output) — looser tolerance.
    out2_bf16 = jax.block_until_ready(
        fc_forward(x2, w2, b2, nl="relu", compute_dtype=jnp.bfloat16)
    )
    assert jnp.allclose(out2_bf16, _ref(x2, w2, b2, "relu"), atol=5e-2, rtol=5e-2)

    print("KERNEL_OK")
</pallas_src>

<mosaic_0001>
module attributes {stable_mosaic.version = 11 : i64} {
  func.func @kernel(%arg0: i32, %arg1: i32, %arg2: i32, %arg3: memref<8x128xf32, #tpu.memory_space<vmem>>, %arg4: memref<128x128xf32, #tpu.memory_space<vmem>>, %arg5: memref<1x128xf32, #tpu.memory_space<vmem>>, %arg6: memref<1x1xf32, #tpu.memory_space<smem>>, %arg7: memref<8x128xf32, #tpu.memory_space<vmem>>) attributes {dimension_semantics = [#tpu.dimension_semantics<parallel>, #tpu.dimension_semantics<parallel>, #tpu.dimension_semantics<arbitrary>], iteration_bounds = array<i64: 1, 1, 1>, scalar_prefetch = 0 : i64, scratch_operands = 0 : i64, tpu.core_type = #tpu.core_type<tc>, window_params = [{transform_indices = @transform_0, window_bounds = array<i64: 8, 128>}, {transform_indices = @transform_1, window_bounds = array<i64: 128, 128>}, {transform_indices = @transform_2, window_bounds = array<i64: 1, 128>}, {transform_indices = @transform_3, window_bounds = array<i64: 1, 1>}, {transform_indices = @transform_4, window_bounds = array<i64: 8, 128>}]} {
    %c0_i32 = arith.constant 0 : i32
    %0 = arith.cmpi eq, %arg2, %c0_i32 : i32
    %1 = arith.extui %0 : i1 to i32
    %c0_i32_0 = arith.constant 0 : i32
    %2 = arith.cmpi ne, %1, %c0_i32_0 : i32
    scf.if %2 {
      %cst_10 = arith.constant 0.000000e+00 : f32
      %12 = vector.broadcast %cst_10 : f32 to vector<8x128xf32>
      %c0_11 = arith.constant 0 : index
      %c0_12 = arith.constant 0 : index
      %13 = vector.load %arg7[%c0_11, %c0_12] : memref<8x128xf32, #tpu.memory_space<vmem>>, vector<8x128xf32>
      tpu.vector_store %arg7[%c0_11, %c0_12], %12 {strides = array<i32>} : memref<8x128xf32, #tpu.memory_space<vmem>>, vector<8x128xf32>,
    } else {
    }
    %c0 = arith.constant 0 : index
    %c0_1 = arith.constant 0 : index
    %3 = vector.load %arg7[%c0, %c0_1] : memref<8x128xf32, #tpu.memory_space<vmem>>, vector<8x128xf32>
    %c0_2 = arith.constant 0 : index
    %c0_3 = arith.constant 0 : index
    %4 = vector.load %arg3[%c0_2, %c0_3] : memref<8x128xf32, #tpu.memory_space<vmem>>, vector<8x128xf32>
    %c0_4 = arith.constant 0 : index
    %c0_5 = arith.constant 0 : index
    %5 = vector.load %arg4[%c0_4, %c0_5] : memref<128x128xf32, #tpu.memory_space<vmem>>, vector<128x128xf32>
    %cst = arith.constant dense<0.000000e+00> : vector<8x128xf32>
    %6 = tpu.matmul %4, %5, %cst {dimension_numbers = #tpu.dot_dimension_numbers<[1], [0], [0], [1], [0, 0, 1, 1], [], []>} : vector<8x128xf32>, vector<128x128xf32>, vector<8x128xf32> -> vector<8x128xf32>
    %7 = arith.addf %3, %6 : vector<8x128xf32>
    %c0_6 = arith.constant 0 : index
    %c0_7 = arith.constant 0 : index
    %8 = vector.load %arg7[%c0_6, %c0_7] : memref<8x128xf32, #tpu.memory_space<vmem>>, vector<8x128xf32>
    tpu.vector_store %arg7[%c0_6, %c0_7], %7 {strides = array<i32>} : memref<8x128xf32, #tpu.memory_space<vmem>>, vector<8x128xf32>,
    %c0_i32_8 = arith.constant 0 : i32
    %9 = arith.cmpi eq, %arg2, %c0_i32_8 : i32
    %10 = arith.extui %9 : i1 to i32
    %c0_i32_9 = arith.constant 0 : i32
    %11 = arith.cmpi ne, %10, %c0_i32_9 : i32
    scf.if %11 {
      %c0_10 = arith.constant 0 : index
      %c0_11 = arith.constant 0 : index
      %12 = vector.load %arg7[%c0_10, %c0_11] : memref<8x128xf32, #tpu.memory_space<vmem>>, vector<8x128xf32>
      %c0_12 = arith.constant 0 : index
      %c0_13 = arith.constant 0 : index
      %13 = vector.load %arg5[%c0_12, %c0_13] : memref<1x128xf32, #tpu.memory_space<vmem>>, vector<1x128xf32>
      %14 = vector.broadcast %13 : vector<1x128xf32> to vector<8x128xf32>
      %15 = arith.addf %12, %14 : vector<8x128xf32>
      %cst_14 = arith.constant 0.000000e+00 : f32
      %16 = vector.broadcast %cst_14 : f32 to vector<8x128xf32>
      %17 = arith.maximumf %15, %16 : vector<8x128xf32>
      %c0_15 = arith.constant 0 : index
      %c0_16 = arith.constant 0 : index
      %18 = vector.load %arg7[%c0_15, %c0_16] : memref<8x128xf32, #tpu.memory_space<vmem>>, vector<8x128xf32>
      tpu.vector_store %arg7[%c0_15, %c0_16], %17 {strides = array<i32>} : memref<8x128xf32, #tpu.memory_space<vmem>>, vector<8x128xf32>,
    } else {
    }
    return
  }
  func.func @transform_0(%arg0: i32, %arg1: i32, %arg2: i32) -> (i32, i32) {
    %c0_i32 = arith.constant 0 : i32
    return %arg1, %arg2 : i32, i32
  }
  func.func @transform_1(%arg0: i32, %arg1: i32, %arg2: i32) -> (i32, i32) {
    %c0_i32 = arith.constant 0 : i32
    return %arg2, %arg0 : i32, i32
  }
  func.func @transform_2(%arg0: i32, %arg1: i32, %arg2: i32) -> (i32, i32) {
    %c0_i32 = arith.constant 0 : i32
    %c0_i32_0 = arith.constant 0 : i32
    return %c0_i32, %arg0 : i32, i32
  }
  func.func @transform_3(%arg0: i32, %arg1: i32, %arg2: i32) -> (i32, i32) {
    %c0_i32 = arith.constant 0 : i32
    %c0_i32_0 = arith.constant 0 : i32
    %c0_i32_1 = arith.constant 0 : i32
    return %c0_i32, %c0_i32_0 : i32, i32
  }
  func.func @transform_4(%arg0: i32, %arg1: i32, %arg2: i32) -> (i32, i32) {
    %c0_i32 = arith.constant 0 : i32
    return %arg1, %arg0 : i32, i32
  }
}

</mosaic_0001>

<bundles_post_ra>
// kernel: tpu_custom_call.1
= control target key start
LH: loop header
LB: loop body
LE: loop exit
PB: predicated region body
PF: predicated region fallthrough
CT: control target
= control target key end

     0   :  { %10 = vsyncpa [#allocation4], 0  ;;  %s340_s0 = inlined_call_operand.hbm [shape: f32[8,128], index: 0, kind: input, shape index: {}]   ;;  %s341_s1 = inlined_call_operand.hbm [shape: f32[128,128], index: 1, kind: input, shape index: {}]   ;;  %s342_s2 = inlined_call_operand.vmem [shape: f32[1,128], index: 2, kind: input, shape index: {}]   ;;  %s343_s3 = inlined_call_operand.<no memory space> [shape: f32[1,1], index: 3, kind: input, shape index: {}]   ;;  %s344_s4 = inlined_call_operand.hbm [shape: f32[8,128], index: 4, kind: output, shape index: {}]  }
   0x1   :  { %11 = vsyncpa [#allocation7], 0 }
   0x2   :  { %12 = vsyncpa [#allocation5], 0  ;;  %s296_s15 = smov [#allocation3]   ;;  %s297_s17 = smov [#allocation6]  }
   0x3   :  { %s19_s16 = sshll.u32 %s296_s15, 4  ;;  %s28_s18 = sshll.u32 %s297_s17, 4  ;;  %s20_s16 = int_to_ptr.vmem [resolvable:$true] %s19_s16  ;;  %s29_s18 = int_to_ptr.vmem [resolvable:$true] %s28_s18 }
   0x4   :  { %s238_s19 = scalar_lea.vmem %s20_s16, 128  ;;  %p243_p1 = scmp.lt.s32.totalorder %s20_s16, %s20_s16 }
   0x5   :  { %p239_p0 = scmp.ne.s32.totalorder %s20_s16, %s238_s19  ;;  %p244_p2 = scmp.lt.s32.totalorder %s238_s19, %s238_s19 }
   0x7   :  { %p245_p3 = por %p244_p2, %p243_p1 }
   0x9   :  { %p246_p4 = pnand %p245_p3, %p239_p0 }
   0xb   :  { %249 = shalt.err (!%p246_p4)
}
   0xc   :  { %22 = dma.hbm_to_vmem [thread:$0]  %s340_s0, 128, %s20_s16, [#allocation4]  }
   0xd   :  { %s258_s21 = scalar_lea.vmem %s29_s18, 2048  ;;  %p263_p6 = scmp.lt.s32.totalorder %s29_s18, %s29_s18 }
   0xe   :  { %p259_p5 = scmp.ne.s32.totalorder %s29_s18, %s258_s21  ;;  %p264_p7 = scmp.lt.s32.totalorder %s258_s21, %s258_s21 }
  0x10   :  { %p265_p8 = por %p264_p7, %p263_p6 }
  0x12   :  { %p266_p9 = pnand %p265_p8, %p259_p5 }
  0x14   :  { %269 = shalt.err (!%p266_p9)
}
  0x15   :  { %s298_s22 = smov 128   ;;  %s299_s23 = smov 8  }
  0x16   :  { %34 = dma.hbm_to_vmem [thread:$0]  %s341_s1, 2048, %s29_s18, [#allocation7], %s298_s22, %s298_s22, %s299_s23  }
  0x17   :  { %290 = dma.done.wait [#allocation4], 128  }
  0x18   :  { %291 = vsyncadd [#allocation4], 4294967168 }
  0x19   :  { %292 = dma.done.wait [#allocation7], 2048  }
  0x1a   :  { %293 = vsyncadd [#allocation7], 4294965248  ;;  %v300_v0 = vmov 0.0   ;;  %vm301_vm0 = vmmov 0   ;;  %v67_v1 = vld [vmem:[#allocation6 + $0x78] sm:$0xff]  ;;  %v66_v2 = vld [vmem:[#allocation6 + $0x70] sm:$0xff] }
  0x1b   :  { %188 = vmatprep.subr.mxu0 %v300_v0  ;;  %220 = vmatprep.mubr.msk.f32.mxu0 %vm301_vm0, %v300_v0  ;;  %v65_v3 = vld [vmem:[#allocation6 + $0x68] sm:$0xff]  ;;  %v64_v4 = vld [vmem:[#allocation6 + $0x60] sm:$0xff]  ;;  %v63_v5 = vld [vmem:[#allocation6 + $0x58] sm:$0xff]  ;;  %s302_s26 = smov [#allocation8]  }
  0x1c   :  { %189 = vmatpush3.msra.mxu0 %v67_v1  ;;  %v62_v6 = vld [vmem:[#allocation6 + $0x50] sm:$0xff]  ;;  %v61_v7 = vld [vmem:[#allocation6 + $0x48] sm:$0xff]  ;;  %v60_v8 = vld [vmem:[#allocation6 + $0x40] sm:$0xff]  ;;  %s160_s27 = sshll.u32 %s302_s26, 4  ;;  %s161_s27 = int_to_ptr.vmem [resolvable:$true] %s160_s27 }
  0x1d   :  { %190 = vmatprep.subr.mxu0 %v300_v0  ;;  %v59_v9 = vld [vmem:[#allocation6 + $0x38] sm:$0xff]  ;;  %v58_v10 = vld [vmem:[#allocation6 + $0x30] sm:$0xff]  ;;  %v57_v11 = vld [vmem:[#allocation6 + $0x28] sm:$0xff]  ;;  %s270_s28 = scalar_lea.vmem %s161_s27, 128  ;;  %p275_p11 = scmp.lt.s32.totalorder %s161_s27, %s161_s27 }
  0x1e   :  { %191 = vmatpush3.msra.mxu0 %v66_v2  ;;  %v56_v12 = vld [vmem:[#allocation6 + $0x20] sm:$0xff]  ;;  %v55_v13 = vld [vmem:[#allocation6 + $0x18] sm:$0xff]  ;;  %v54_v14 = vld [vmem:[#allocation6 + $0x10] sm:$0xff]  ;;  %p271_p10 = scmp.ne.s32.totalorder %s161_s27, %s270_s28  ;;  %p276_p12 = scmp.lt.s32.totalorder %s270_s28, %s270_s28 }
  0x1f   :  { %192 = vmatprep.subr.mxu0 %v300_v0  ;;  %v53_v15 = vld [vmem:[#allocation6 + $0x8] sm:$0xff]  ;;  %v52_v16 = vld [vmem:[#allocation6] sm:$0xff]  ;;  %v51_v17 = vld [vmem:[#allocation3] sm:$0xff] }
  0x20   :  { %193 = vmatpush3.msra.mxu0 %v65_v3  ;;  %v170_v19 = vld [vmem:[%s342_s2] ss:$0 sm:$0xff]  ;;  %p277_p13 = por %p276_p12, %p275_p11 }
  0x21   :  { %194 = vmatprep.subr.mxu0 %v300_v0 }
  0x22   :  { %195 = vmatpush3.msra.mxu0 %v64_v4  ;;  %p278_p0 = pnand %p277_p13, %p271_p10 }
  0x23   :  { %196 = vmatprep.subr.mxu0 %v300_v0 }
  0x24   :  { %197 = vmatpush3.msra.mxu0 %v63_v5 }
  0x25   :  { %198 = vmatprep.subr.mxu0 %v300_v0 }
  0x26   :  { %199 = vmatpush3.msra.mxu0 %v62_v6 }
  0x27   :  { %200 = vmatprep.subr.mxu0 %v300_v0 }
  0x28   :  { %201 = vmatpush3.msra.mxu0 %v61_v7 }
  0x29   :  { %202 = vmatprep.subr.mxu0 %v300_v0 }
  0x2a   :  { %203 = vmatpush3.msra.mxu0 %v60_v8 }
  0x2b   :  { %204 = vmatprep.subr.mxu0 %v300_v0 }
  0x2c   :  { %205 = vmatpush3.msra.mxu0 %v59_v9 }
  0x2d   :  { %206 = vmatprep.subr.mxu0 %v300_v0 }
  0x2e   :  { %207 = vmatpush3.msra.mxu0 %v58_v10 }
  0x2f   :  { %208 = vmatprep.subr.mxu0 %v300_v0 }
  0x30   :  { %209 = vmatpush3.msra.mxu0 %v57_v11 }
  0x31   :  { %210 = vmatprep.subr.mxu0 %v300_v0 }
  0x32   :  { %211 = vmatpush3.msra.mxu0 %v56_v12 }
  0x33   :  { %212 = vmatprep.subr.mxu0 %v300_v0 }
  0x34   :  { %213 = vmatpush3.msra.mxu0 %v55_v13 }
  0x35   :  { %214 = vmatprep.subr.mxu0 %v300_v0 }
  0x36   :  { %215 = vmatpush3.msra.mxu0 %v54_v14 }
  0x37   :  { %216 = vmatprep.subr.mxu0 %v300_v0 }
  0x38   :  { %217 = vmatpush3.msra.mxu0 %v53_v15 }
  0x39   :  { %218 = vmatprep.subr.mxu0 %v300_v0 }
  0x3a   :  { %219 = vmatpush3.msra.mxu0 %v52_v16 }
  0x3b   :  { %221 = vmatmul.mubr.f32.vlgmr.msra.gmra.mxu0 %v51_v17 }
  0xfb   :  { %v134_v18 = vpop.f32.mrf.mxu0 }
  0xfc   :  { %v151_v21 = vadd.f32 %v170_v19, %v134_v18 }
  0xfd   :  { %v222_v20 = vpop.f32.mrf.mxu0 }
  0xfe   :  { %v152_v22 = vmax.f32 %v151_v21, 0.0 }
 0x100   :  { %153 = vst [vmem:[#allocation8] sm:$0xff] %v152_v22 }
 0x101   :  { %281 = shalt.err (!%p278_p0)
}
 0x102   :  { %163 = dma.vmem_to_hbm [thread:$0]  %s161_s27, 128, %s344_s4, [#allocation5]  }
 0x103   :  { %294 = dma.done.wait [#allocation5], 128  }
 0x104   :  { %295 = vsyncadd [#allocation5], 4294967168 }
 0x105   :  { %167 = vsyncpa [#allocation4], 1 }
 0x106   :  { %168 = vsyncpa [#allocation7], 1 }
 0x107   :  { %169 = vsyncpa [#allocation5], 1 }

</bundles_post_ra>
